<compile_context>
chip_gen: v7x
topology: tpu7x:2x2x1
jax: 0.10.0
libtpu: 0.0.40
codegen_flags: <defaults>
</compile_context>

<pallas_src>
import jax
import jax.numpy as jnp
from jax.experimental import pallas as pl
from jax.experimental.pallas import tpu as pltpu

_LANE = 128


def _round_up(x, m):
    return ((x + m - 1) // m) * m


def _dropconnect1d_kernel(scale_ref, x_ref, o_ref):
    """One grid step: a (B, col_tile) column slab of the flattened tensor.

    scale_ref: (B, 1) float32 in VMEM, value is 0.0 or 1/keep_prob per batch row.
    """
    o_ref[...] = (x_ref[...].astype(jnp.float32) * scale_ref[...]).astype(o_ref.dtype)


def dropconnect1d(x, key, p=0.2, training=True, target_block_bytes=2 * 1024 * 1024):
    """DropConnect1d forward. x: (batch, C, time). key: jax PRNG key for the mask."""
    if not training or p == 0.0:
        return x

    B, C, T = x.shape
    keep_prob = 1.0 - p
    itemsize = x.dtype.itemsize

    # Per-batch scale (0 or 1/keep_prob): B scalars, trivially cheap in plain JAX.
    u = jax.random.uniform(key, (B, 1), dtype=jnp.float32)
    scale = jnp.floor(u + jnp.float32(keep_prob)) * jnp.float32(1.0 / keep_prob)

    # Metadata-only reshape; no padded clone, no post-slice copy.
    F = C * T
    x2 = x.reshape(B, F)

    if F <= _LANE:
        # Tiny feature dim: one full-extent block (last dim == array dim is legal).
        col_tile = F
    else:
        # ~target_block_bytes per buffer; multiple of 128 lanes; at least 2 tiles
        # so both v7x TensorCores get work (moot on single-TC v5e/v6e).
        cols_for_target = max(
            _LANE, (target_block_bytes // max(B * itemsize, 1)) // _LANE * _LANE
        )
        half_cols = _round_up(pl.cdiv(F, 2), _LANE)
        col_tile = min(cols_for_target, half_cols)

    grid = (pl.cdiv(F, col_tile),)

    cost = pl.CostEstimate(
        flops=B * F,
        transcendentals=0,
        bytes_accessed=2 * B * F * itemsize + B * 4,
    )

    out2 = pl.pallas_call(
        _dropconnect1d_kernel,
        out_shape=jax.ShapeDtypeStruct((B, F), x.dtype),
        grid=grid,
        in_specs=[
            # Same block index every step -> fetched into VMEM once.
            pl.BlockSpec((B, 1), lambda j: (0, 0)),
            pl.BlockSpec((B, col_tile), lambda j: (0, j)),
        ],
        out_specs=pl.BlockSpec((B, col_tile), lambda j: (0, j)),
        compiler_params=pltpu.CompilerParams(
            # Column slabs are fully independent.
            dimension_semantics=("parallel",),
            # 2x(in)+2x(out) buffers at <= ~2 MiB each stay well under this on
            # every generation (v7x scoped default is 32 MiB of 64 MiB physical).
            vmem_limit_bytes=32 * 1024 * 1024,
        ),
        cost_estimate=cost,
    )(scale, x2)

    return out2.reshape(B, C, T)


def _reference(x, key, p):
    """Pure-JAX reference with the identical mask derivation."""
    B = x.shape[0]
    keep_prob = 1.0 - p
    u = jax.random.uniform(key, (B, 1), dtype=jnp.float32)
    scale = jnp.floor(u + jnp.float32(keep_prob)) * jnp.float32(1.0 / keep_prob)
    return (x.astype(jnp.float32) * scale[:, :, None]).astype(x.dtype)


if __name__ == "__main__":
    key = jax.random.PRNGKey(0)
    data_key, mask_key, data_key2, mask_key2 = jax.random.split(key, 4)

    p = 0.2
    keep_prob = 1.0 - p

    # Small shape implied by the module: (batch, C, time).
    B, C, T = 2, 4, 16
    x = jax.random.normal(data_key, (B, C, T), dtype=jnp.float32)

    out = jax.block_until_ready(dropconnect1d(x, mask_key, p=p, training=True))

    # Each batch slice is either all-zero or exactly x / keep_prob.
    for b in range(B):
        slab = out[b]
        is_zero = bool(jnp.all(slab == 0.0))
        is_scaled = bool(jnp.allclose(slab, x[b] / keep_prob, rtol=1e-6, atol=1e-6))
        assert is_zero or is_scaled, f"batch {b}: not a valid drop-connect output"
    assert bool(jnp.allclose(out, _reference(x, mask_key, p), rtol=1e-6, atol=1e-6))

    # Second shape exercising multi-tile grid + ragged (non-128-multiple) F.
    B2, C2, T2 = 3, 5, 50   # F = 250 -> col_tile = 128, grid = (2,), masked edge tile
    x2 = jax.random.normal(data_key2, (B2, C2, T2), dtype=jnp.float32)
    out2 = jax.block_until_ready(dropconnect1d(x2, mask_key2, p=p, training=True))
    assert bool(jnp.allclose(out2, _reference(x2, mask_key2, p), rtol=1e-6, atol=1e-6))

    # Eval mode: identity.
    out_eval = jax.block_until_ready(dropconnect1d(x, mask_key, p=p, training=False))
    assert bool(jnp.array_equal(out_eval, x))

    print("KERNEL_OK")
</pallas_src>

<mosaic_0001>
module attributes {stable_mosaic.version = 11 : i64} {
  func.func @_dropconnect1d_kernel(%arg0: i32, %arg1: memref<2x1xf32, #tpu.memory_space<vmem>>, %arg2: memref<2x64xf32, #tpu.memory_space<vmem>>, %arg3: memref<2x64xf32, #tpu.memory_space<vmem>>) attributes {dimension_semantics = [#tpu.dimension_semantics<parallel>], iteration_bounds = array<i64: 1>, scalar_prefetch = 0 : i64, scratch_operands = 0 : i64, tpu.core_type = #tpu.core_type<tc>, window_params = [{pipeline_mode = #tpu.pipeline_mode<synchronous>, transform_indices = @transform_0, window_bounds = array<i64: 2, 1>}, {transform_indices = @transform_1, window_bounds = array<i64: 2, 64>}, {transform_indices = @transform_2, window_bounds = array<i64: 2, 64>}]} {
    %c0 = arith.constant 0 : index
    %c0_0 = arith.constant 0 : index
    %0 = vector.load %arg2[%c0, %c0_0] : memref<2x64xf32, #tpu.memory_space<vmem>>, vector<2x64xf32>
    %c0_1 = arith.constant 0 : index
    %c0_2 = arith.constant 0 : index
    %1 = vector.load %arg1[%c0_1, %c0_2] : memref<2x1xf32, #tpu.memory_space<vmem>>, vector<2x1xf32>
    %2 = vector.broadcast %1 : vector<2x1xf32> to vector<2x64xf32>
    %3 = arith.mulf %0, %2 : vector<2x64xf32>
    %c0_3 = arith.constant 0 : index
    %c0_4 = arith.constant 0 : index
    %4 = vector.load %arg3[%c0_3, %c0_4] : memref<2x64xf32, #tpu.memory_space<vmem>>, vector<2x64xf32>
    tpu.vector_store %arg3[%c0_3, %c0_4], %3 {strides = array<i32>} : memref<2x64xf32, #tpu.memory_space<vmem>>, vector<2x64xf32>,
    return
  }
  func.func @transform_0(%arg0: i32) -> (i32, i32) {
    %c0_i32 = arith.constant 0 : i32
    %c0_i32_0 = arith.constant 0 : i32
    %c0_i32_1 = arith.constant 0 : i32
    return %c0_i32, %c0_i32_0 : i32, i32
  }
  func.func @transform_1(%arg0: i32) -> (i32, i32) {
    %c0_i32 = arith.constant 0 : i32
    %c0_i32_0 = arith.constant 0 : i32
    return %c0_i32, %arg0 : i32, i32
  }
  func.func @transform_2(%arg0: i32) -> (i32, i32) {
    %c0_i32 = arith.constant 0 : i32
    %c0_i32_0 = arith.constant 0 : i32
    return %c0_i32, %arg0 : i32, i32
  }
}

</mosaic_0001>

<bundles_post_ra>
// kernel: tpu_custom_call.1
= control target key start
LH: loop header
LB: loop body
LE: loop exit
PB: predicated region body
PF: predicated region fallthrough
CT: control target
= control target key end

     0   :  { %s98_s0 = inlined_call_operand.vmem [shape: f32[2,1], index: 0, kind: input, shape index: {}]   ;;  %s99_s1 = inlined_call_operand.vmem [shape: f32[2,64], index: 1, kind: input, shape index: {}]   ;;  %s100_s2 = inlined_call_operand.hbm [shape: f32[2,64], index: 2, kind: output, shape index: {}]  }
   0x1   :  { %v13_v0 = vld [vmem:[%s98_s0] sm:$0x3] }
   0x2   :  { %7 = vsyncpa [#allocation3], 0  ;;  %v63_v1 = vmov 0   ;;  %v12_v2 = vld [vmem:[%s99_s1] sm:$0x3]  ;;  %s64_s13 = smov [#allocation2]  }
   0x3   :  { %38 = vset.pattern.permute.xlu0 %v63_v1  ;;  %s28_s14 = sshll.u32 %s64_s13, 4  ;;  %vm20_vm0 = vcmask 517120   ;;  %s29_s14 = int_to_ptr.vmem [resolvable:$true] %s28_s14 }
   0x4   :  { %16 = vperm.xlu0 %38, %v13_v0   ;;  %s39_s15 = scalar_lea.vmem %s29_s14, 32  ;;  %p44_p1 = scmp.lt.s32.totalorder %s29_s14, %s29_s14 }
   0x5   :  { %p40_p0 = scmp.ne.s32.totalorder %s29_s14, %s39_s15  ;;  %p45_p2 = scmp.lt.s32.totalorder %s39_s15, %s39_s15 }
   0x7   :  { %p46_p3 = por %p45_p2, %p44_p1 }
   0x9   :  { %p47_p4 = pnand %p46_p3, %p40_p0 }
  0x83   :  { %v17_v3 = vpop.permute.xlu0 %16 }
  0x84   :  { %v19_v4 = vmul.f32 %v17_v3, %v12_v2 }
  0x86   :  { %21 = vst.msk [vmem:[#allocation2] sm:$0x3] %vm20_vm0, %v19_v4 }
  0x87   :  { %50 = shalt.err (!%p47_p4)
}
  0x88   :  { %s51_s17 = scalar_lea.hbm %s100_s2, 32 }
  0x89   :  { %p52_p5 = scmp.ne.s32.totalorder %s100_s2, %s51_s17  ;;  %p55_p6 = scmp.lt.u32.totalorder %s51_s17, %s100_s2 }
  0x8b   :  { %p57_p7 = pnand %p55_p6, %p52_p5 }
  0x8d   :  { %60 = shalt.err (!%p57_p7)
}
  0x8e   :  { %31 = dma.vmem_to_hbm [thread:$0]  %s29_s14, 32, %s100_s2, [#allocation3]  }
  0x8f   :  { %61 = dma.done.wait [#allocation3], 32  }
  0x90   :  { %62 = vsyncadd [#allocation3], 4294967264 }
  0x91   :  { %35 = vsyncpa [#allocation3], 1 }

</bundles_post_ra>
